<compile_context>
chip_gen: v6e
topology: v6e:2x2x1
jax: 0.10.0
libtpu: 0.0.40
codegen_flags: <defaults>
</compile_context>

<pallas_src>
import jax
import jax.numpy as jnp
from jax.experimental import pallas as pl
from jax.experimental.pallas import tpu as pltpu

LANE = 128                       # lane width / channel padding target
SUB = 16                         # sublane padding (safe for bf16 packing)
MATMUL_DTYPE = jnp.bfloat16      # MXU-native operand dtype (f32 accumulation)
ACT_DTYPE = jnp.bfloat16         # activations carried in bf16 end-to-end
VMEM_LIMIT = 32 * 1024 * 1024    # conservative for v7x (64 MiB physical VMEM);
                                 # could be raised on v5e/v6e (128 MiB)
CONV_ROWS_BUDGET = 4096          # max flat rows per conv3x3 row tile


# ----------------------------------------------------------------------------
# small helpers
# ----------------------------------------------------------------------------
def _round_up(x, m):
    return (x + m - 1) // m * m


def _pad_axis(x, axis, mult):
    size = x.shape[axis]
    target = _round_up(size, mult)
    if target == size:
        return x
    pads = [(0, 0)] * x.ndim
    pads[axis] = (0, target - size)
    return jnp.pad(x, pads)


def _apply_act(acc, act):
    if act == "relu":
        return jnp.maximum(acc, 0.0)
    if act == "lrelu":
        # EDVR-style LeakyReLU slope 0.1 (nn.LeakyReLU default would be 0.01).
        return jnp.where(acc >= 0.0, acc, 0.1 * acc)
    if act == "sigmoid":
        return jax.nn.sigmoid(acc)
    return acc


# ----------------------------------------------------------------------------
# Pallas kernels
# ----------------------------------------------------------------------------
def _matmul_bias_act(a, w, b, act=None, out_dtype=ACT_DTYPE):
    """o = act(a @ w + b).  bf16 operands, f32 accumulation, bf16 output.

    Single-K fast path when K fits one block (common case: K = 128); otherwise
    a gridded (M,N,K) matmul with an f32 VMEM accumulator.
    """
    M, K = a.shape
    N = w.shape[1]

    a = _pad_axis(_pad_axis(a, 0, SUB), 1, LANE).astype(MATMUL_DTYPE)
    w = _pad_axis(_pad_axis(w, 0, LANE), 1, LANE).astype(MATMUL_DTYPE)
    b = _pad_axis(b, 1, LANE).astype(jnp.float32)
    Mp, Kp = a.shape
    Np = w.shape[1]

    tm = min(Mp, 512)
    a = _pad_axis(a, 0, tm)
    Mp = a.shape[0]
    tn = 256 if Np % 256 == 0 else 128      # 256-wide N fills the v6e/v7x MXU
    tk = Kp if Kp <= 512 else (512 if Kp % 512 == 0
                               else (256 if Kp % 256 == 0 else 128))

    flops = 2 * Mp * Np * Kp
    transc = Mp * Np if act == "sigmoid" else 0
    bytes_acc = Mp * Kp * 2 + Kp * Np * 2 + Np * 4 + Mp * Np * 2
    cost = pl.CostEstimate(flops=flops, transcendentals=transc,
                           bytes_accessed=bytes_acc)

    if tk == Kp:
        # one K step: skip the accumulator scratch and pl.when epilogue
        def kernel(a_ref, w_ref, b_ref, o_ref):
            acc = jnp.dot(a_ref[...], w_ref[...],
                          preferred_element_type=jnp.float32) + b_ref[...]
            o_ref[...] = _apply_act(acc, act).astype(o_ref.dtype)

        out = pl.pallas_call(
            kernel,
            out_shape=jax.ShapeDtypeStruct((Mp, Np), out_dtype),
            grid=(Mp // tm, Np // tn),
            in_specs=[pl.BlockSpec((tm, Kp), lambda i, j: (i, 0)),
                      pl.BlockSpec((Kp, tn), lambda i, j: (0, j)),
                      pl.BlockSpec((1, tn), lambda i, j: (0, j))],
            out_specs=pl.BlockSpec((tm, tn), lambda i, j: (i, j)),
            compiler_params=pltpu.CompilerParams(
                dimension_semantics=("parallel", "parallel"),
                vmem_limit_bytes=VMEM_LIMIT),
            cost_estimate=cost,
        )(a, w, b)
        return out[:M, :N]

    def kernel(a_ref, w_ref, b_ref, o_ref, acc_ref):
        @pl.when(pl.program_id(2) == 0)
        def _():
            acc_ref[...] = jnp.zeros_like(acc_ref)

        acc_ref[...] += jnp.dot(a_ref[...], w_ref[...],
                                preferred_element_type=jnp.float32)

        @pl.when(pl.program_id(2) == pl.num_programs(2) - 1)
        def _():
            o_ref[...] = _apply_act(acc_ref[...] + b_ref[...],
                                    act).astype(o_ref.dtype)

    out = pl.pallas_call(
        kernel,
        out_shape=jax.ShapeDtypeStruct((Mp, Np), out_dtype),
        grid=(Mp // tm, Np // tn, Kp // tk),
        in_specs=[pl.BlockSpec((tm, tk), lambda i, j, k: (i, k)),
                  pl.BlockSpec((tk, tn), lambda i, j, k: (k, j)),
                  pl.BlockSpec((1, tn), lambda i, j, k: (0, j))],
        out_specs=pl.BlockSpec((tm, tn), lambda i, j, k: (i, j)),
        scratch_shapes=[pltpu.VMEM((tm, tn), jnp.float32)],
        compiler_params=pltpu.CompilerParams(
            dimension_semantics=("parallel", "parallel", "arbitrary"),
            vmem_limit_bytes=VMEM_LIMIT),
        cost_estimate=cost,
    )(a, w, b)
    return out[:M, :N]


def conv3x3(x, w9, b, act=None, residual=None, out_dtype=ACT_DTYPE):
    """Direct 3x3 same-padding conv, row-tiled with a manual-DMA halo window.

    x : (B, H, W, Cin)  bf16, channels lane-padded (multiple of 128)
    w9: (9, Cin, Co)    tap-major bf16 weights
    b : (1, Co)         f32 bias
    residual (optional): (B, H, W, Co), added in the epilogue (post-activation).

    Structure: the padded image rows are flattened (row width Wp, a multiple of
    16 so every tap window read is sublane-aligned for bf16).  Per row tile we
    DMA a (th+2)-image-row halo window into VMEM (input cannot be expressed as
    non-overlapping BlockSpec tiles), compute per-dx partials
        q_dx[s] = sum_dy xwin[s + dy*Wp] @ w[dy,dx]         (aligned reads)
    and combine  out[s] = q0[s] + q1[s+1] + q2[s+2]  (2 small shifted adds),
    then write only the valid W columns.
    """
    B, H, W, Cin = x.shape
    Co = w9.shape[-1]
    x = x.astype(jnp.bfloat16)
    w9 = w9.astype(jnp.bfloat16)
    b = b.astype(jnp.float32)

    Wp = _round_up(W + 2, SUB)
    th = H
    while th % 2 == 0 and th * Wp > CONV_ROWS_BUDGET:
        th //= 2
    if th * Wp > CONV_ROWS_BUDGET:
        for d in range(th - 1, 0, -1):
            if H % d == 0 and d * Wp <= CONV_ROWS_BUDGET:
                th = d
                break
    Tn = H // th
    R = th * Wp                   # flat output rows per tile
    Rq = R + SUB                  # per-dx partial length (covers s+2)
    Rin = (th + 2) * Wp + SUB     # halo window rows
    blk = th * Wp
    Ntot = (H + 2) * Wp + SUB     # flat rows incl. tail pad (keeps DMA in-bounds)

    xp = jnp.pad(x, ((0, 0), (1, 1), (1, Wp - W - 1), (0, 0)))
    xflat = xp.reshape(B, (H + 2) * Wp, Cin)
    xflat = jnp.pad(xflat, ((0, 0), (0, Ntot - (H + 2) * Wp), (0, 0)))

    has_res = residual is not None

    def kernel(x_hbm, w_ref, b_ref, *rest):
        if has_res:
            r_ref, o_ref, xwin, sem = rest
        else:
            o_ref, xwin, sem = rest
        bi = pl.program_id(0)
        ti = pl.program_id(1)
        start = pl.multiple_of(ti * blk, blk)
        # TODO(synk): double-buffer the halo-window DMA across row tiles.
        cp = pltpu.make_async_copy(x_hbm.at[bi, pl.ds(start, Rin), :], xwin, sem)
        cp.start()
        cp.wait()

        # per-dx partial sums, all window reads 16-row aligned (dy*Wp % 16 == 0)
        win = xwin[pl.ds(0, Rq), :]
        q = [jnp.dot(win, w_ref[dx], preferred_element_type=jnp.float32)
             for dx in range(3)]
        for dy in (1, 2):
            win = xwin[pl.ds(dy * Wp, Rq), :]
            for dx in range(3):
                q[dx] = q[dx] + jnp.dot(win, w_ref[dy * 3 + dx],
                                        preferred_element_type=jnp.float32)
        # out[s] = q0[s] + q1[s+1] + q2[s+2]
        acc = q[0][:R] + q[1][1:R + 1] + q[2][2:R + 2]
        acc = _apply_act(acc + b_ref[...], act)
        acc = acc.reshape(th, Wp, Co)[:, :W, :]   # drop junk columns in-kernel
        if has_res:
            acc = acc + r_ref[0].astype(jnp.float32)
        o_ref[0] = acc.astype(o_ref.dtype)

    in_specs = [pl.BlockSpec(memory_space=pl.ANY),
                pl.BlockSpec((9, Cin, Co), lambda bi, ti: (0, 0, 0)),
                pl.BlockSpec((1, Co), lambda bi, ti: (0, 0))]
    args = [xflat, w9, b]
    if has_res:
        in_specs.append(pl.BlockSpec((1, th, W, Co),
                                     lambda bi, ti: (bi, ti, 0, 0)))
        args.append(residual)

    return pl.pallas_call(
        kernel,
        out_shape=jax.ShapeDtypeStruct((B, H, W, Co), out_dtype),
        grid=(B, Tn),
        in_specs=in_specs,
        out_specs=pl.BlockSpec((1, th, W, Co), lambda bi, ti: (bi, ti, 0, 0)),
        scratch_shapes=[pltpu.VMEM((Rin, Cin), jnp.bfloat16),
                        pltpu.SemaphoreType.DMA],
        compiler_params=pltpu.CompilerParams(
            dimension_semantics=("parallel", "parallel"),
            vmem_limit_bytes=VMEM_LIMIT),
    )(*args)


def _temporal_attention(emb, embr, x, tm=1024):
    """TCEA temporal attention, tiled over M with lane-dense output blocks.

    emb, x : (N, M, Cp)   per-frame embeddings / features (M = B*H*W)
    embr   : (M, Cp)      center-frame embedding
    returns: (M, N*Cp)    frames reweighted by sigmoid(<emb_n, emb_ref>).
    """
    N, M, C = emb.shape
    emb = _pad_axis(emb, 1, SUB)
    x = _pad_axis(x, 1, SUB)
    embr = _pad_axis(embr, 0, SUB)
    tm = min(tm, emb.shape[1])
    emb = _pad_axis(emb, 1, tm)
    x = _pad_axis(x, 1, tm)
    embr = _pad_axis(embr, 0, tm)
    Mp = emb.shape[1]

    def kernel(e_ref, er_ref, x_ref, o_ref):
        cor = jnp.sum(e_ref[0].astype(jnp.float32) *
                      er_ref[...].astype(jnp.float32), axis=-1, keepdims=True)
        o_ref[...] = (x_ref[0].astype(jnp.float32) *
                      jax.nn.sigmoid(cor)).astype(o_ref.dtype)

    out = pl.pallas_call(
        kernel,
        out_shape=jax.ShapeDtypeStruct((Mp, N * C), x.dtype),
        grid=(N, Mp // tm),
        in_specs=[
            pl.BlockSpec((1, tm, C), lambda n, mi: (n, mi, 0)),
            pl.BlockSpec((tm, C), lambda n, mi: (mi, 0)),
            pl.BlockSpec((1, tm, C), lambda n, mi: (n, mi, 0)),
        ],
        out_specs=pl.BlockSpec((tm, C), lambda n, mi: (mi, n)),
        compiler_params=pltpu.CompilerParams(
            dimension_semantics=("parallel", "parallel")),
    )(emb, embr, x)
    return out[:M]


def _fusion_attention(aligned, w2, b2, scale=2.0, tm=1024, out_dtype=ACT_DTYPE):
    """Fused: out = lrelu(a@w_fus+b_fus) * sigmoid(a@w_satt+b_satt) * scale.

    w2 is the CONCATENATED (K, 2*Cp) weight ([:, :Cp]=fusion, [:, Cp:]=satt) so
    a single 256-wide MXU dot produces both halves.
    """
    M, K = aligned.shape
    Cp = w2.shape[1] // 2
    a = _pad_axis(aligned, 0, SUB)
    tm = min(tm, a.shape[0])
    a = _pad_axis(a, 0, tm)
    Mp = a.shape[0]
    a = a.astype(MATMUL_DTYPE)
    w2 = w2.astype(MATMUL_DTYPE)
    b2 = b2.astype(jnp.float32)

    def kernel(a_ref, w_ref, b_ref, o_ref):
        res = jnp.dot(a_ref[...], w_ref[...],
                      preferred_element_type=jnp.float32) + b_ref[...]
        fea = res[:, :Cp]
        att = res[:, Cp:]
        fea = jnp.where(fea >= 0.0, fea, 0.1 * fea)
        att = jax.nn.sigmoid(att)
        o_ref[...] = (fea * att * scale).astype(o_ref.dtype)

    out = pl.pallas_call(
        kernel,
        out_shape=jax.ShapeDtypeStruct((Mp, Cp), out_dtype),
        grid=(Mp // tm,),
        in_specs=[
            pl.BlockSpec((tm, K), lambda i: (i, 0)),
            pl.BlockSpec((K, 2 * Cp), lambda i: (0, 0)),
            pl.BlockSpec((1, 2 * Cp), lambda i: (0, 0)),
        ],
        out_specs=pl.BlockSpec((tm, Cp), lambda i: (i, 0)),
        compiler_params=pltpu.CompilerParams(
            dimension_semantics=("parallel",),
            vmem_limit_bytes=VMEM_LIMIT),
    )(a, w2, b2)
    return out[:M]


def _ew_add(a, b, tr=2048):
    """Tiled elementwise residual add on (R, Cp) tensors (mixed dtypes ok)."""
    R, C = a.shape
    out_dtype = jnp.promote_types(a.dtype, b.dtype)
    a8 = _pad_axis(a, 0, SUB)
    b8 = _pad_axis(b, 0, SUB)
    tr = min(tr, a8.shape[0])
    a8 = _pad_axis(a8, 0, tr)
    b8 = _pad_axis(b8, 0, tr)
    Rp = a8.shape[0]

    def kernel(a_ref, b_ref, o_ref):
        o_ref[...] = (a_ref[...].astype(out_dtype) +
                      b_ref[...].astype(out_dtype))

    out = pl.pallas_call(
        kernel,
        out_shape=jax.ShapeDtypeStruct((Rp, C), out_dtype),
        grid=(Rp // tr,),
        in_specs=[pl.BlockSpec((tr, C), lambda i: (i, 0)),
                  pl.BlockSpec((tr, C), lambda i: (i, 0))],
        out_specs=pl.BlockSpec((tr, C), lambda i: (i, 0)),
        compiler_params=pltpu.CompilerParams(dimension_semantics=("parallel",)),
    )(a8, b8)
    return out[:R]


def _mean_over_first(x, tr=1024):
    """x:(L, R, Cp) -> (R, Cp) mean over leading axis (gather() averaging)."""
    L, R, C = x.shape
    inv = 1.0 / L
    x8 = _pad_axis(x, 1, SUB)
    tr = min(tr, x8.shape[1])
    x8 = _pad_axis(x8, 1, tr)
    Rp = x8.shape[1]

    def kernel(x_ref, o_ref):
        s = jnp.sum(x_ref[...].astype(jnp.float32), axis=0) * inv
        o_ref[...] = s.astype(o_ref.dtype)

    out = pl.pallas_call(
        kernel,
        out_shape=jax.ShapeDtypeStruct((Rp, C), x.dtype),
        grid=(Rp // tr,),
        in_specs=[pl.BlockSpec((L, tr, C), lambda i: (0, i, 0))],
        out_specs=pl.BlockSpec((tr, C), lambda i: (i, 0)),
        compiler_params=pltpu.CompilerParams(dimension_semantics=("parallel",)),
    )(x8)
    return out[:R]


def _max_over_first(x, residual=None, tr=1024):
    """x:(K, R, Cp) -> (R, Cp) max over leading axis, optional fused +residual."""
    K, R, C = x.shape
    out_dtype = x.dtype if residual is None else jnp.promote_types(
        x.dtype, residual.dtype)
    x8 = _pad_axis(x, 1, SUB)
    r8 = _pad_axis(residual, 0, SUB) if residual is not None else None
    tr = min(tr, x8.shape[1])
    x8 = _pad_axis(x8, 1, tr)
    if r8 is not None:
        r8 = _pad_axis(r8, 0, tr)
    Rp = x8.shape[1]

    def kernel(*refs):
        if residual is not None:
            x_ref, r_ref, o_ref = refs
            o_ref[...] = (jnp.max(x_ref[...], axis=0).astype(out_dtype) +
                          r_ref[...].astype(out_dtype))
        else:
            x_ref, o_ref = refs
            o_ref[...] = jnp.max(x_ref[...], axis=0)

    in_specs = [pl.BlockSpec((K, tr, C), lambda i: (0, i, 0))]
    args = [x8]
    if residual is not None:
        in_specs.append(pl.BlockSpec((tr, C), lambda i: (i, 0)))
        args.append(r8)

    out = pl.pallas_call(
        kernel,
        out_shape=jax.ShapeDtypeStruct((Rp, C), out_dtype),
        grid=(Rp // tr,),
        in_specs=in_specs,
        out_specs=pl.BlockSpec((tr, C), lambda i: (i, 0)),
        compiler_params=pltpu.CompilerParams(dimension_semantics=("parallel",)),
    )(*args)
    return out[:R]


def _nearest_resize_add(bsf, xin):
    """Fused: out = nearest_resize(bsf, xin.shape[1:3]) + xin.

    The row selection is expressed in the BlockSpec index_map (the source row
    block index is (o*Hg)//OH), so bsf is only read at its source resolution;
    columns are pre-expanded in JAX on the SMALL source tensor.
    """
    B, Hg, Wg, C = bsf.shape
    _, OH, OW, _ = xin.shape
    wi = (jnp.arange(OW) * Wg) // OW
    bsf_wide = bsf[:, :, wi, :]                       # (B, Hg, OW, C), small
    out_dtype = jnp.promote_types(bsf.dtype, xin.dtype)

    def kernel(b_ref, x_ref, o_ref):
        o_ref[...] = (b_ref[...].astype(out_dtype) +
                      x_ref[...].astype(out_dtype))

    return pl.pallas_call(
        kernel,
        out_shape=jax.ShapeDtypeStruct(xin.shape, out_dtype),
        grid=(B, OH),
        in_specs=[
            pl.BlockSpec((1, 1, OW, C), lambda b, o: (b, (o * Hg) // OH, 0, 0)),
            pl.BlockSpec((1, 1, OW, C), lambda b, o: (b, o, 0, 0)),
        ],
        out_specs=pl.BlockSpec((1, 1, OW, C), lambda b, o: (b, o, 0, 0)),
        compiler_params=pltpu.CompilerParams(
            dimension_semantics=("parallel", "arbitrary")),
    )(bsf_wide, xin)


# ----------------------------------------------------------------------------
# Conv / pool / resize wrappers (Pallas compute, JAX glue)
# ----------------------------------------------------------------------------
def conv1x1(x, w, b, act=None):
    B, H, W, C = x.shape
    y = _matmul_bias_act(x.reshape(B * H * W, C), w, b, act)
    return y.reshape(B, H, W, -1)


def adaptive_max_pool(x, out_hw, residual=None):
    """Equivalent to F.adaptive_max_pool2d for integer-ratio sizes.
    Optional fused residual add on the pooled result."""
    B, H, W, C = x.shape
    oh, ow = out_hw
    if (oh, ow) == (H, W):
        if residual is None:
            return x
        return _ew_add(x.reshape(-1, C),
                       residual.reshape(-1, C)).reshape(residual.shape)
    kh, kw = H // oh, W // ow
    # TODO(synk): non-integer adaptive pooling ratios (variable windows) not supported.
    assert H == oh * kh and W == ow * kw
    # TODO(synk): pooling windows still gathered via an XLA transpose before the
    # Pallas max (kept for lowering robustness).
    xr = x.reshape(B, oh, kh, ow, kw, C)
    xr = jnp.transpose(xr, (2, 4, 0, 1, 3, 5)).reshape(kh * kw, B * oh * ow, C)
    res_flat = residual.reshape(B * oh * ow, C) if residual is not None else None
    y = _max_over_first(xr, res_flat)
    if residual is not None:
        return y.reshape(residual.shape)
    return y.reshape(B, oh, ow, C)


def nearest_resize(x, oh, ow):
    """F.interpolate(mode='nearest'): src = floor(dst * in/out)."""
    B, H, W, C = x.shape
    if (oh, ow) == (H, W):
        return x
    hi = (jnp.arange(oh) * H) // oh
    wi = (jnp.arange(ow) * W) // ow
    return x[:, hi][:, :, wi]


def gather(inputs_nhwc, refine_level):
    gh, gw = inputs_nhwc[refine_level].shape[1:3]
    feats = []
    for i, x in enumerate(inputs_nhwc):
        x16 = x.astype(jnp.bfloat16)
        if i < refine_level:
            feats.append(adaptive_max_pool(x16, (gh, gw)))
        else:
            feats.append(nearest_resize(x16, gh, gw))
    B, _, _, Cp = feats[0].shape
    stacked = jnp.stack([f.reshape(B * gh * gw, Cp) for f in feats], axis=0)
    bsf = _mean_over_first(stacked)
    return bsf.reshape(B, gh, gw, Cp)


def flow_warp(x, flow):
    """Bilinear warp, border padding.  x:(B,H,W,Cp), flow:(B,H,W,>=2)=(dx,dy)."""
    # TODO(synk): grid_sample-style data-dependent gather stays in plain JAX
    # (no clean rectangular-tile Pallas equivalent).
    B, H, W, C = x.shape
    f32 = jnp.float32
    yy, xx = jnp.meshgrid(jnp.arange(H, dtype=f32), jnp.arange(W, dtype=f32),
                          indexing="ij")
    sx = xx[None] + flow[..., 0].astype(f32)
    sy = yy[None] + flow[..., 1].astype(f32)
    x0 = jnp.floor(sx)
    y0 = jnp.floor(sy)
    wx = sx - x0
    wy = sy - y0
    x0i = jnp.clip(x0.astype(jnp.int32), 0, W - 1)
    x1i = jnp.clip(x0.astype(jnp.int32) + 1, 0, W - 1)
    y0i = jnp.clip(y0.astype(jnp.int32), 0, H - 1)
    y1i = jnp.clip(y0.astype(jnp.int32) + 1, 0, H - 1)

    def per_batch(img, y0b, x0b, y1b, x1b, wxb, wyb):
        img = img.astype(f32)
        i00 = img[y0b, x0b]
        i01 = img[y0b, x1b]
        i10 = img[y1b, x0b]
        i11 = img[y1b, x1b]
        wxb = wxb[..., None]
        wyb = wyb[..., None]
        return (1 - wyb) * ((1 - wxb) * i00 + wxb * i01) + wyb * (
            (1 - wxb) * i10 + wxb * i11)

    out = jax.vmap(per_batch)(x, y0i, x0i, y1i, x1i, wx, wy)
    return out.astype(x.dtype)


# ----------------------------------------------------------------------------
# Sub-modules (synthetic, deterministic weights; lane-padded layouts)
# ----------------------------------------------------------------------------
def liteflownet(params, bsf, warp_bsf, flow, c_real):
    # TODO(synk): full LiteFlowNetCorr cost-volume/correlation not reproduced
    # (source unavailable); implemented as a small refinement CNN over
    # concat(bsf, warped ref, flow) -> flow residual (flow add fused in conv2).
    x = jnp.concatenate([bsf[..., :c_real], warp_bsf[..., :c_real],
                         flow[..., :2]], axis=-1)          # packed real channels
    x = _pad_axis(x, 3, LANE).astype(jnp.bfloat16)
    h = conv3x3(x, params["lfn_w1"], params["lfn_b1"], act="lrelu")
    flow_fine = conv3x3(h, params["lfn_w2"], params["lfn_b2"], act=None,
                        residual=flow)                      # fused flow residual
    return flow_fine


def tcea_fusion(params, stack):
    """stack: (B, N, H, W, Cp) bf16 -> fused (B, H, W, Cp) bf16."""
    B, N, H, W, C = stack.shape
    center = N // 2
    M = B * H * W

    # center-frame embedding (1x1 conv)
    emb_ref = conv1x1(stack[:, center], params["tatt2_w"], params["tatt2_b"])

    # all-frame embeddings in ONE batched matmul
    x_arr = jnp.transpose(stack, (1, 0, 2, 3, 4)).reshape(N, M, C)
    embs = _matmul_bias_act(x_arr.reshape(N * M, C), params["tatt1_w"],
                            params["tatt1_b"]).reshape(N, M, C)

    aligned = _temporal_attention(embs, emb_ref.reshape(M, C), x_arr)  # (M,N*Cp)

    # fused feature-fusion (lrelu) + spatial attention (sigmoid) + *2 scaling
    # TODO(synk): full EDVR spatial-attention pyramid simplified to a 1x1 sigmoid gate.
    out = _fusion_attention(aligned, params["fussatt_w"], params["fussatt_b"],
                            scale=2.0)
    return out.reshape(B, H, W, C)


def init_params(key, C, nframes, cp=LANE):
    """Synthetic weights, zero-padded into lane-dense layouts.  Real channels
    are packed contiguously so pad lanes stay inert (identical math to the
    small-C module).  Biases are zero (matches xavier_init; a real checkpoint
    would need its bias values loaded here)."""
    ks = jax.random.split(key, 8)

    def w(k, shape):
        return 0.1 * jax.random.normal(k, shape, jnp.float32)

    def pad_conv(m, cout_pad):
        cin_pad = _round_up(m.shape[2], cp)
        out = jnp.zeros((3, 3, cin_pad, cout_pad), m.dtype)
        out = out.at[:, :, :m.shape[2], :m.shape[3]].set(m)
        return out.reshape(9, cin_pad, cout_pad).astype(jnp.bfloat16)

    def pad_mat(m, rows, cols):
        return jnp.pad(m, ((0, rows - m.shape[0]), (0, cols - m.shape[1])))

    def zeros_bias(cols):
        return jnp.zeros((1, cols), jnp.float32)

    lfn_w1 = w(ks[0], (3, 3, 2 * C + 2, C))
    lfn_w2 = w(ks[1], (3, 3, C, 2))
    tatt1_w = w(ks[2], (C, C))
    tatt2_w = w(ks[3], (C, C))
    fus_w = w(ks[4], (nframes * C, C))
    satt_w = w(ks[5], (nframes * C, C))
    refine_w = w(ks[6], (3, 3, C, C))

    # fused fus/satt weight: rows per-frame at n*cp (matches aligned layout),
    # columns [:cp]=fusion, [cp:]=spatial attention -> one 256-wide MXU dot.
    fussatt = jnp.zeros((nframes * cp, 2 * cp), jnp.float32)
    for n in range(nframes):
        fussatt = fussatt.at[n * cp:n * cp + C, :C].set(fus_w[n * C:(n + 1) * C])
        fussatt = fussatt.at[n * cp:n * cp + C, cp:cp + C].set(
            satt_w[n * C:(n + 1) * C])

    return {
        "lfn_w1": pad_conv(lfn_w1, cp),
        "lfn_b1": zeros_bias(cp),
        "lfn_w2": pad_conv(lfn_w2, cp),
        "lfn_b2": zeros_bias(cp),
        "tatt1_w": pad_mat(tatt1_w, cp, cp),
        "tatt1_b": zeros_bias(cp),
        "tatt2_w": pad_mat(tatt2_w, cp, cp),
        "tatt2_b": zeros_bias(cp),
        "fussatt_w": fussatt,
        "fussatt_b": zeros_bias(2 * cp),
        "refine_w": pad_conv(refine_w, cp),
        "refine_b": zeros_bias(cp),
    }


# ----------------------------------------------------------------------------
# BFPTceaMulti forward (PyTorch-facing NCHW interface)
# ----------------------------------------------------------------------------
def bfp_tcea_multi_forward(
    params,
    inputs,
    ref_inputs,
    flow_init,
    next_inputs=None,
    next_flow_init=None,
    refine_level=1,
    refine_type="conv",
):
    c_real = inputs[0].shape[1]

    def to_nhwc_padded(t, dtype=jnp.float32):
        return _pad_axis(jnp.transpose(t, (0, 2, 3, 1)), 3, LANE).astype(dtype)

    to_nchw = lambda t: jnp.transpose(t, (0, 3, 1, 2))

    inputs_h = [to_nhwc_padded(x) for x in inputs]                 # f32 (residual adds)
    ref_h = [to_nhwc_padded(x, jnp.bfloat16) for x in ref_inputs]
    flow_h = to_nhwc_padded(flow_init, jnp.bfloat16)               # real flow in ch 0..1

    bsf = gather(inputs_h, refine_level)
    ref_bsf = gather(ref_h, refine_level)

    warp_bsf = flow_warp(ref_bsf, flow_h)
    flow_fine = liteflownet(params, bsf, warp_bsf, flow_h, c_real)
    warp_bsf = flow_warp(warp_bsf, flow_fine)

    if next_inputs is not None:
        next_h = [to_nhwc_padded(x, jnp.bfloat16) for x in next_inputs]
        nflow_h = to_nhwc_padded(next_flow_init, jnp.bfloat16)
        next_bsf = gather(next_h, refine_level)
        next_warp = flow_warp(next_bsf, nflow_h)
        next_flow_fine = liteflownet(params, bsf, next_warp, nflow_h, c_real)
        next_warp = flow_warp(next_warp, next_flow_fine)
        bsf_stack = jnp.stack([warp_bsf, bsf, next_warp], axis=1)  # (B,3,H,W,Cp)
    else:
        bsf_stack = jnp.stack([bsf, warp_bsf], axis=1)

    bsf = tcea_fusion(params, bsf_stack)

    if refine_type == "conv":
        bsf = conv3x3(bsf, params["refine_w"], params["refine_b"], act="relu")

    Cp = bsf.shape[-1]
    outs = []
    for i, xin in enumerate(inputs_h):
        oh, ow = xin.shape[1], xin.shape[2]
        if i < refine_level:
            out = _nearest_resize_add(bsf, xin)                    # fused resize+add
        elif (oh, ow) == (bsf.shape[1], bsf.shape[2]):
            out = _ew_add(bsf.reshape(-1, Cp),
                          xin.reshape(-1, Cp)).reshape(xin.shape)
        else:
            out = adaptive_max_pool(bsf, (oh, ow), residual=xin)   # fused pool+add
        out = out[..., :c_real].astype(inputs[i].dtype)
        outs.append(to_nchw(out))
    return tuple(outs)


# ----------------------------------------------------------------------------
if __name__ == "__main__":
    key = jax.random.PRNGKey(0)
    B, C = 2, 4
    num_levels, refine_level, nframes = 2, 1, 3
    shapes = [(B, C, 16, 16), (B, C, 8, 8)]

    ks = jax.random.split(key, 8)
    inputs = [jax.random.normal(ks[i], s, jnp.float32) for i, s in enumerate(shapes)]
    ref_inputs = [
        jax.random.normal(ks[2 + i], s, jnp.float32) for i, s in enumerate(shapes)
    ]
    next_inputs = [
        jax.random.normal(ks[4 + i], s, jnp.float32) for i, s in enumerate(shapes)
    ]
    flow_init = jax.random.normal(ks[6], (B, 2, 8, 8), jnp.float32)
    next_flow_init = jax.random.normal(ks[7], (B, 2, 8, 8), jnp.float32)

    params = init_params(jax.random.PRNGKey(42), C, nframes)

    outs = bfp_tcea_multi_forward(
        params,
        inputs,
        ref_inputs,
        flow_init,
        next_inputs,
        next_flow_init,
        refine_level=refine_level,
        refine_type="conv",
    )
    jax.block_until_ready(outs)
    assert len(outs) == num_levels
    for o, x in zip(outs, inputs):
        assert o.shape == x.shape and o.dtype == x.dtype
        assert bool(jnp.all(jnp.isfinite(o)))
    print("KERNEL_OK")
</pallas_src>

<mosaic_0001>
module attributes {stable_mosaic.version = 11 : i64} {
  func.func @kernel(%arg0: i32, %arg1: memref<4x128x128xbf16, #tpu.memory_space<vmem>>, %arg2: memref<128x128xbf16, #tpu.memory_space<vmem>>) attributes {dimension_semantics = [#tpu.dimension_semantics<parallel>], iteration_bounds = array<i64: 1>, scalar_prefetch = 0 : i64, scratch_operands = 0 : i64, tpu.core_type = #tpu.core_type<tc>, window_params = [{transform_indices = @transform_0, window_bounds = array<i64: 4, 128, 128>}, {transform_indices = @transform_1, window_bounds = array<i64: 128, 128>}]} {
    %c0 = arith.constant 0 : index
    %c0_0 = arith.constant 0 : index
    %c0_1 = arith.constant 0 : index
    %0 = vector.load %arg1[%c0, %c0_0, %c0_1] : memref<4x128x128xbf16, #tpu.memory_space<vmem>>, vector<4x128x128xbf16>
    %cst = arith.constant dense<0xFF80> : vector<128x128xbf16>
    %1 = vector.multi_reduction <maximumf>, %0, %cst [0] : vector<4x128x128xbf16> to vector<128x128xbf16>
    %c0_2 = arith.constant 0 : index
    %c0_3 = arith.constant 0 : index
    %2 = vector.load %arg2[%c0_2, %c0_3] : memref<128x128xbf16, #tpu.memory_space<vmem>>, vector<128x128xbf16>
    tpu.vector_store %arg2[%c0_2, %c0_3], %1 {strides = array<i32>} : memref<128x128xbf16, #tpu.memory_space<vmem>>, vector<128x128xbf16>,
    return
  }
  func.func @transform_0(%arg0: i32) -> (i32, i32, i32) {
    %c0_i32 = arith.constant 0 : i32
    %c0_i32_0 = arith.constant 0 : i32
    %c0_i32_1 = arith.constant 0 : i32
    return %c0_i32, %arg0, %c0_i32_0 : i32, i32, i32
  }
  func.func @transform_1(%arg0: i32) -> (i32, i32) {
    %c0_i32 = arith.constant 0 : i32
    %c0_i32_0 = arith.constant 0 : i32
    return %arg0, %c0_i32 : i32, i32
  }
}

</mosaic_0001>

<bundles_post_ra>
// kernel: tpu_custom_call.1
= control target key start
LH: loop header
LB: loop body
LE: loop exit
PB: predicated region body
PF: predicated region fallthrough
CT: control target
= control target key end

     0   :  { %6 = vsyncpa [#allocation3], 0  ;;  %s556_s0 = inlined_call_operand.hbm [shape: bf16[4,128,128], index: 0, kind: input, shape index: {}]   ;;  %s557_s1 = inlined_call_operand.hbm [shape: bf16[128,128], index: 1, kind: output, shape index: {}]  }
   0x1   :  { %7 = vsyncpa [#allocation4], 0  ;;  %s466_s6 = smov [#allocation2]  }
   0x2   :  { %s13_s7 = sshll.u32 %s466_s6, 4  ;;  %s14_s7 = int_to_ptr.vmem [resolvable:$true] %s13_s7 }
   0x3   :  { %s430_s8 = scalar_lea.vmem %s14_s7, 4096  ;;  %p435_p1 = scmp.lt.s32.totalorder %s14_s7, %s14_s7 }
   0x4   :  { %p431_p0 = scmp.ne.s32.totalorder %s14_s7, %s430_s8  ;;  %p436_p2 = scmp.lt.s32.totalorder %s430_s8, %s430_s8 }
   0x6   :  { %p437_p3 = por %p436_p2, %p435_p1 }
   0x8   :  { %p438_p4 = pnand %p437_p3, %p431_p0 }
   0xa   :  { %441 = shalt.err (!%p438_p4)
}
   0xb   :  { %s467_s9 = smov 64   ;;  %s468_s10 = smov 4  }
   0xc   :  { %19 = dma.hbm_to_vmem [thread:$0]  %s556_s0, 4096, %s14_s7, [#allocation3], %s467_s9, %s467_s9, %s468_s10  }
   0xd   :  { %462 = dma.done.wait [#allocation3], 4096  }
   0xe   :  { %463 = vsyncadd [#allocation3], 4294963200  ;;  %vm88_vm0 = vcmask 1043456   ;;  %v24_v0 = vld [vmem:[#allocation2] sm:$0xf]  ;;  %s469_s0 = smov [#allocation5]  }
   0xf   :  { %v25_v1 = vld [vmem:[#allocation2 + $0x4] sm:$0xf]  ;;  %v40_v2 = vld [vmem:[#allocation2 + $0x40] sm:$0xf]  ;;  %v91_v8 = vsel %vm88_vm0, %v24_v0, 4286644096 }
  0x10   :  { %v41_v3 = vld [vmem:[#allocation2 + $0x44] sm:$0xf]  ;;  %v56_v4 = vld [vmem:[#allocation2 + $0x80] sm:$0xf]  ;;  %v94_v9 = vsel %vm88_vm0, %v40_v2, 4286644096 }
  0x11   :  { %v57_v5 = vld [vmem:[#allocation2 + $0x84] sm:$0xf]  ;;  %v72_v6 = vld [vmem:[#allocation2 + $0xc0] sm:$0xf]  ;;  %v98_v10 = vsel %vm88_vm0, %v56_v4, 4286644096  ;;  %v96_v12 = vmax.bf16 %v94_v9, %v91_v8 }
  0x12   :  { %v73_v7 = vld [vmem:[#allocation2 + $0xc4] sm:$0xf]  ;;  %v102_v11 = vsel %vm88_vm0, %v72_v6, 4286644096  ;;  %v106_v13 = vsel %vm88_vm0, %v25_v1, 4286644096 }
  0x13   :  { %v109_v14 = vsel %vm88_vm0, %v41_v3, 4286644096  ;;  %v113_v15 = vsel %vm88_vm0, %v57_v5, 4286644096  ;;  %v117_v17 = vsel %vm88_vm0, %v73_v7, 4286644096  ;;  %v100_v20 = vmax.bf16 %v98_v10, %v96_v12 }
  0x14   :  { %v111_v16 = vmax.bf16 %v109_v14, %v106_v13  ;;  %v26_v18 = vld [vmem:[#allocation2 + $0x8] sm:$0xf]  ;;  %v27_v19 = vld [vmem:[#allocation2 + $0xc] sm:$0xf]  ;;  %v28_v36 = vld [vmem:[#allocation2 + $0x10] sm:$0xf] }
  0x15   :  { %v42_v21 = vld [vmem:[#allocation2 + $0x48] sm:$0xf]  ;;  %v43_v22 = vld [vmem:[#allocation2 + $0x4c] sm:$0xf]  ;;  %v104_v28 = vmax.bf16 %v102_v11, %v100_v20  ;;  %v121_v29 = vsel %vm88_vm0, %v26_v18, 4286644096 }
  0x16   :  { %v58_v23 = vld [vmem:[#allocation2 + $0x88] sm:$0xf]  ;;  %v115_v24 = vmax.bf16 %v113_v15, %v111_v16  ;;  %v59_v25 = vld [vmem:[#allocation2 + $0x8c] sm:$0xf]  ;;  %v124_v30 = vsel %vm88_vm0, %v42_v21, 4286644096 }
  0x17   :  { %v74_v26 = vld [vmem:[#allocation2 + $0xc8] sm:$0xf]  ;;  %v75_v27 = vld [vmem:[#allocation2 + $0xcc] sm:$0xf]  ;;  %v128_v31 = vsel %vm88_vm0, %v58_v23, 4286644096  ;;  %v126_v33 = vmax.bf16 %v124_v30, %v121_v29 }
  0x18   :  { %v119_v32 = vmax.bf16 %v117_v17, %v115_v24  ;;  %v132_v34 = vsel %vm88_vm0, %v74_v26, 4286644096  ;;  %v136_v35 = vsel %vm88_vm0, %v27_v19, 4286644096  ;;  %v139_v37 = vsel %vm88_vm0, %v43_v22, 4286644096 }
  0x19   :  { %v143_v38 = vsel %vm88_vm0, %v59_v25, 4286644096  ;;  %v147_v39 = vsel %vm88_vm0, %v75_v27, 4286644096  ;;  %v130_v41 = vmax.bf16 %v128_v31, %v126_v33  ;;  %v141_v42 = vmax.bf16 %v139_v37, %v136_v35  ;;  %v29_v43 = vld [vmem:[#allocation2 + $0x14] sm:$0xf] }
  0x1a   :  { %v403_v40 = vcombine.low %v104_v28, %v119_v32  ;;  %v44_v44 = vld [vmem:[#allocation2 + $0x50] sm:$0xf]  ;;  %v45_v45 = vld [vmem:[#allocation2 + $0x54] sm:$0xf]  ;;  %v151_v52 = vsel %vm88_vm0, %v28_v36, 4286644096 }
  0x1b   :  { %v60_v46 = vld [vmem:[#allocation2 + $0x90] sm:$0xf]  ;;  %v61_v47 = vld [vmem:[#allocation2 + $0x94] sm:$0xf]  ;;  %v134_v49 = vmax.bf16 %v132_v34, %v130_v41  ;;  %v145_v50 = vmax.bf16 %v143_v38, %v141_v42  ;;  %v154_v53 = vsel %vm88_vm0, %v44_v44, 4286644096 }
  0x1c   :  { %v76_v48 = vld [vmem:[#allocation2 + $0xd0] sm:$0xf]  ;;  %367 = vst [vmem:[#allocation5] sm:$0xff] %v403_v40   ;;  %v77_v51 = vld [vmem:[#allocation2 + $0xd4] sm:$0xf]  ;;  %v156_v54 = vmax.bf16 %v154_v53, %v151_v52  ;;  %s351_s13 = sshll.u32 %s469_s0, 4  ;;  %s352_s13 = int_to_ptr.vmem [resolvable:$true] %s351_s13 }
  0x1d   :  { %v158_v55 = vsel %vm88_vm0, %v60_v46, 4286644096  ;;  %v162_v56 = vsel %vm88_vm0, %v76_v48, 4286644096  ;;  %v166_v57 = vsel %vm88_vm0, %v29_v43, 4286644096  ;;  %v149_v58 = vmax.bf16 %v147_v39, %v145_v50  ;;  %p447_p6 = scmp.lt.s32.totalorder %s352_s13, %s352_s13 }
  0x1e   :  { %v169_v59 = vsel %vm88_vm0, %v45_v45, 4286644096  ;;  %v173_v60 = vsel %vm88_vm0, %v61_v47, 4286644096  ;;  %v177_v61 = vsel %vm88_vm0, %v77_v51, 4286644096  ;;  %v160_v62 = vmax.bf16 %v158_v55, %v156_v54 }
  0x1f   :  { %v171_v63 = vmax.bf16 %v169_v59, %v166_v57  ;;  %v30_v0 = vld [vmem:[#allocation2 + $0x18] sm:$0xf]  ;;  %v31_v1 = vld [vmem:[#allocation2 + $0x1c] sm:$0xf]  ;;  %v404_v3 = vcombine.low %v134_v49, %v149_v58  ;;  %v32_v19 = vld [vmem:[#allocation2 + $0x20] sm:$0xf] }
  0x20   :  { %v46_v2 = vld [vmem:[#allocation2 + $0x58] sm:$0xf]  ;;  %v47_v4 = vld [vmem:[#allocation2 + $0x5c] sm:$0xf]  ;;  %v164_v7 = vmax.bf16 %v162_v56, %v160_v62  ;;  %v181_v11 = vsel %vm88_vm0, %v30_v0, 4286644096 }
  0x21   :  { %v62_v5 = vld [vmem:[#allocation2 + $0x98] sm:$0xf]  ;;  %v63_v6 = vld [vmem:[#allocation2 + $0x9c] sm:$0xf]  ;;  %v175_v8 = vmax.bf16 %v173_v60, %v171_v63  ;;  %405 = vst [vmem:[#allocation5 + $0x8] sm:$0xff] %v404_v3   ;;  %s442_s14 = scalar_lea.vmem %s352_s13, 1024 }
  0x22   :  { %v78_v9 = vld [vmem:[#allocation2 + $0xd8] sm:$0xf]  ;;  %v79_v10 = vld [vmem:[#allocation2 + $0xdc] sm:$0xf]  ;;  %v184_v12 = vsel %vm88_vm0, %v46_v2, 4286644096  ;;  %p443_p5 = scmp.ne.s32.totalorder %s352_s13, %s442_s14  ;;  %p448_p7 = scmp.lt.s32.totalorder %s442_s14, %s442_s14 }
  0x23   :  { %v188_v13 = vsel %vm88_vm0, %v62_v5, 4286644096  ;;  %v192_v14 = vsel %vm88_vm0, %v78_v9, 4286644096  ;;  %v179_v15 = vmax.bf16 %v177_v61, %v175_v8  ;;  %v186_v16 = vmax.bf16 %v184_v12, %v181_v11  ;;  %v33_v23 = vld [vmem:[#allocation2 + $0x24] sm:$0xf] }
  0x24   :  { %v196_v17 = vsel %vm88_vm0, %v31_v1, 4286644096  ;;  %v199_v18 = vsel %vm88_vm0, %v47_v4, 4286644096  ;;  %v203_v21 = vsel %vm88_vm0, %v63_v6, 4286644096  ;;  %p449_p8 = por %p448_p7, %p447_p6 }
  0x25   :  { %v201_v20 = vmax.bf16 %v199_v18, %v196_v17  ;;  %v207_v22 = vsel %vm88_vm0, %v79_v10, 4286644096  ;;  %v406_v24 = vcombine.low %v164_v7, %v179_v15  ;;  %v190_v25 = vmax.bf16 %v188_v13, %v186_v16  ;;  %v48_v26 = vld [vmem:[#allocation2 + $0x60] sm:$0xf]  ;;  %v49_v27 = vld [vmem:[#allocation2 + $0x64] sm:$0xf] }
  0x26   :  { %v64_v28 = vld [vmem:[#allocation2 + $0xa0] sm:$0xf]  ;;  %v65_v30 = vld [vmem:[#allocation2 + $0xa4] sm:$0xf]  ;;  %v211_v34 = vsel %vm88_vm0, %v32_v19, 4286644096  ;;  %p450_p9 = pnand %p449_p8, %p443_p5 }
  0x27   :  { %v205_v29 = vmax.bf16 %v203_v21, %v201_v20  ;;  %v80_v31 = vld [vmem:[#allocation2 + $0xe0] sm:$0xf]  ;;  %v81_v32 = vld [vmem:[#allocation2 + $0xe4] sm:$0xf]  ;;  %407 = vst [vmem:[#allocation5 + $0x10] sm:$0xff] %v406_v24   ;;  %v194_v33 = vmax.bf16 %v192_v14, %v190_v25 }
  0x28   :  { %v214_v35 = vsel %vm88_vm0, %v48_v26, 4286644096  ;;  %v218_v36 = vsel %vm88_vm0, %v64_v28, 4286644096  ;;  %v222_v39 = vsel %vm88_vm0, %v80_v31, 4286644096 }
  0x29   :  { %v209_v37 = vmax.bf16 %v207_v22, %v205_v29  ;;  %v216_v38 = vmax.bf16 %v214_v35, %v211_v34  ;;  %v226_v40 = vsel %vm88_vm0, %v33_v23, 4286644096  ;;  %v34_v41 = vld [vmem:[#allocation2 + $0x28] sm:$0xf]  ;;  %v229_v42 = vsel %vm88_vm0, %v49_v27, 4286644096 }
  0x2a   :  { %v233_v43 = vsel %vm88_vm0, %v65_v30, 4286644096  ;;  %v237_v44 = vsel %vm88_vm0, %v81_v32, 4286644096  ;;  %v231_v47 = vmax.bf16 %v229_v42, %v226_v40  ;;  %v35_v48 = vld [vmem:[#allocation2 + $0x2c] sm:$0xf] }
  0x2b   :  { %v408_v45 = vcombine.low %v194_v33, %v209_v37  ;;  %v220_v46 = vmax.bf16 %v218_v36, %v216_v38  ;;  %v50_v49 = vld [vmem:[#allocation2 + $0x68] sm:$0xf]  ;;  %v51_v50 = vld [vmem:[#allocation2 + $0x6c] sm:$0xf]  ;;  %v241_v57 = vsel %vm88_vm0, %v34_v41, 4286644096 }
  0x2c   :  { %v66_v51 = vld [vmem:[#allocation2 + $0xa8] sm:$0xf]  ;;  %v67_v52 = vld [vmem:[#allocation2 + $0xac] sm:$0xf]  ;;  %v235_v55 = vmax.bf16 %v233_v43, %v231_v47  ;;  %v244_v58 = vsel %vm88_vm0, %v50_v49, 4286644096 }
  0x2d   :  { %v82_v53 = vld [vmem:[#allocation2 + $0xe8] sm:$0xf]  ;;  %409 = vst [vmem:[#allocation5 + $0x18] sm:$0xff] %v408_v45   ;;  %v224_v54 = vmax.bf16 %v222_v39, %v220_v46  ;;  %v83_v56 = vld [vmem:[#allocation2 + $0xec] sm:$0xf]  ;;  %v246_v59 = vmax.bf16 %v244_v58, %v241_v57 }
  0x2e   :  { %v248_v60 = vsel %vm88_vm0, %v66_v51, 4286644096  ;;  %v252_v61 = vsel %vm88_vm0, %v82_v53, 4286644096  ;;  %v256_v62 = vsel %vm88_vm0, %v35_v48, 4286644096  ;;  %v239_v63 = vmax.bf16 %v237_v44, %v235_v55 }
  0x2f   :  { %v259_v0 = vsel %vm88_vm0, %v51_v50, 4286644096  ;;  %v263_v1 = vsel %vm88_vm0, %v67_v52, 4286644096  ;;  %v267_v2 = vsel %vm88_vm0, %v83_v56, 4286644096  ;;  %v250_v3 = vmax.bf16 %v248_v60, %v246_v59 }
  0x30   :  { %v261_v4 = vmax.bf16 %v259_v0, %v256_v62  ;;  %v36_v5 = vld [vmem:[#allocation2 + $0x30] sm:$0xf]  ;;  %v37_v6 = vld [vmem:[#allocation2 + $0x34] sm:$0xf]  ;;  %v410_v8 = vcombine.low %v224_v54, %v239_v63  ;;  %v38_v27 = vld [vmem:[#allocation2 + $0x38] sm:$0xf] }
  0x31   :  { %v52_v7 = vld [vmem:[#allocation2 + $0x70] sm:$0xf]  ;;  %v53_v9 = vld [vmem:[#allocation2 + $0x74] sm:$0xf]  ;;  %v254_v12 = vmax.bf16 %v252_v61, %v250_v3  ;;  %v271_v16 = vsel %vm88_vm0, %v36_v5, 4286644096 }
  0x32   :  { %v68_v10 = vld [vmem:[#allocation2 + $0xb0] sm:$0xf]  ;;  %v69_v11 = vld [vmem:[#allocation2 + $0xb4] sm:$0xf]  ;;  %v265_v13 = vmax.bf16 %v263_v1, %v261_v4  ;;  %411 = vst [vmem:[#allocation5 + $0x20] sm:$0xff] %v410_v8  }
  0x33   :  { %v84_v14 = vld [vmem:[#allocation2 + $0xf0] sm:$0xf]  ;;  %v85_v15 = vld [vmem:[#allocation2 + $0xf4] sm:$0xf]  ;;  %v274_v17 = vsel %vm88_vm0, %v52_v7, 4286644096 }
  0x34   :  { %v278_v18 = vsel %vm88_vm0, %v68_v10, 4286644096  ;;  %v282_v19 = vsel %vm88_vm0, %v84_v14, 4286644096  ;;  %v269_v20 = vmax.bf16 %v267_v2, %v265_v13  ;;  %v276_v21 = vmax.bf16 %v274_v17, %v271_v16  ;;  %v39_v30 = vld [vmem:[#allocation2 + $0x3c] sm:$0xf] }
  0x35   :  { %v286_v22 = vsel %vm88_vm0, %v37_v6, 4286644096  ;;  %v289_v23 = vsel %vm88_vm0, %v53_v9, 4286644096  ;;  %v293_v25 = vsel %vm88_vm0, %v69_v11, 4286644096 }
  0x36   :  { %v291_v24 = vmax.bf16 %v289_v23, %v286_v22  ;;  %v297_v26 = vsel %vm88_vm0, %v85_v15, 4286644096  ;;  %v412_v28 = vcombine.low %v254_v12, %v269_v20  ;;  %v280_v29 = vmax.bf16 %v278_v18, %v276_v21  ;;  %v54_v31 = vld [vmem:[#allocation2 + $0x78] sm:$0xf]  ;;  %v55_v34 = vld [vmem:[#allocation2 + $0x7c] sm:$0xf] }
  0x37   :  { %v70_v32 = vld [vmem:[#allocation2 + $0xb8] sm:$0xf]  ;;  %v71_v35 = vld [vmem:[#allocation2 + $0xbc] sm:$0xf]  ;;  %v301_v38 = vsel %vm88_vm0, %v38_v27, 4286644096 }
  0x38   :  { %v295_v33 = vmax.bf16 %v293_v25, %v291_v24  ;;  %v86_v36 = vld [vmem:[#allocation2 + $0xf8] sm:$0xf]  ;;  %413 = vst [vmem:[#allocation5 + $0x28] sm:$0xff] %v412_v28   ;;  %v284_v37 = vmax.bf16 %v282_v19, %v280_v29  ;;  %v304_v39 = vsel %vm88_vm0, %v54_v31, 4286644096 }
  0x39   :  { %v308_v40 = vsel %vm88_vm0, %v70_v32, 4286644096  ;;  %v87_v42 = vld [vmem:[#allocation2 + $0xfc] sm:$0xf]  ;;  %v306_v43 = vmax.bf16 %v304_v39, %v301_v38  ;;  %v316_v44 = vsel %vm88_vm0, %v39_v30, 4286644096 }
  0x3a   :  { %v299_v41 = vmax.bf16 %v297_v26, %v295_v33  ;;  %v312_v45 = vsel %vm88_vm0, %v86_v36, 4286644096  ;;  %v319_v46 = vsel %vm88_vm0, %v55_v34, 4286644096  ;;  %v323_v47 = vsel %vm88_vm0, %v71_v35, 4286644096 }
  0x3b   :  { %v310_v49 = vmax.bf16 %v308_v40, %v306_v43  ;;  %v321_v50 = vmax.bf16 %v319_v46, %v316_v44  ;;  %v327_v51 = vsel %vm88_vm0, %v87_v42, 4286644096 }
  0x3c   :  { %v414_v48 = vcombine.low %v284_v37, %v299_v41 }
  0x3d   :  { %v314_v52 = vmax.bf16 %v312_v45, %v310_v49  ;;  %v325_v53 = vmax.bf16 %v323_v47, %v321_v50 }
  0x3e   :  { %415 = vst [vmem:[#allocation5 + $0x30] sm:$0xff] %v414_v48  }
  0x3f   :  { %v329_v54 = vmax.bf16 %v327_v51, %v325_v53 }
  0x41   :  { %v416_v55 = vcombine.low %v314_v52, %v329_v54 }
  0x43   :  { %417 = vst [vmem:[#allocation5 + $0x38] sm:$0xff] %v416_v55  }
  0x44   :  { %453 = shalt.err (!%p450_p9)
}
  0x45   :  { %357 = dma.vmem_to_hbm [thread:$0]  %s352_s13, 1024, %s557_s1, [#allocation4], %s467_s9, %s467_s9, %s468_s10  }
  0x46   :  { %464 = dma.done.wait [#allocation4], 1024  }
  0x47   :  { %465 = vsyncadd [#allocation4], 4294966272 }
  0x48   :  { %361 = vsyncpa [#allocation3], 1 }
  0x49   :  { %362 = vsyncpa [#allocation4], 1 }

</bundles_post_ra>
